<compile_context>
chip_gen: v7x
topology: tpu7x:2x2x1
jax: 0.10.0
libtpu: 0.0.40
codegen_flags: <defaults>
</compile_context>

<pallas_src>
import functools

import jax
import jax.numpy as jnp
from jax import lax
from jax.experimental import pallas as pl
from jax.experimental.pallas import tpu as pltpu

_VMEM_LIMIT = 32 * 1024 * 1024   # scoped VMEM limit; safe on v5e/v6e/v7x
_TM = 512                        # row tile for the pointwise (1x1) matmuls


def _round_up(x, m):
    return (x + m - 1) // m * m


# ----------------------------- Pallas kernels ------------------------------

def _pw_bn_kernel(x_ref, w_ref, s_ref, b_ref, o_ref, *, relu):
    # (TM, Cin) @ (Cin, Cout) * scale + bias  [-> relu]
    y = jnp.dot(x_ref[...], w_ref[...], preferred_element_type=jnp.float32)
    y = y * s_ref[...] + b_ref[...]
    if relu:
        y = jnp.maximum(y, 0.0)
    o_ref[...] = y.astype(o_ref.dtype)


def _pw_bn_add_identity_kernel(x_ref, w_ref, s_ref, b_ref, r_ref, o_ref):
    # conv3(1x1) + bn3 fused with identity shortcut + final ReLU.
    y = jnp.dot(x_ref[...], w_ref[...], preferred_element_type=jnp.float32)
    y = y * s_ref[...] + b_ref[...]
    y = y + r_ref[...].astype(jnp.float32)
    o_ref[...] = jnp.maximum(y, 0.0).astype(o_ref.dtype)


def _pw_bn_add_proj_kernel(x_ref, w_ref, s_ref, b_ref,
                           xs_ref, ws_ref, ss_ref, bs_ref, o_ref):
    # conv3(1x1) + bn3 fused with projection shortcut (1x1 conv + bn) + ReLU.
    y = jnp.dot(x_ref[...], w_ref[...], preferred_element_type=jnp.float32)
    y = y * s_ref[...] + b_ref[...]
    sc = jnp.dot(xs_ref[...], ws_ref[...], preferred_element_type=jnp.float32)
    sc = sc * ss_ref[...] + bs_ref[...]
    o_ref[...] = jnp.maximum(y + sc, 0.0).astype(o_ref.dtype)


def _conv3x3_bn_relu_kernel(x_ref, w_ref, s_ref, b_ref, o_ref, pad_ref, *, stride):
    # x_ref:  (1, H, W, Cin)      one image (bf16)
    # w_ref:  (3, 3*Cin, Cout)    weights regrouped per kernel-row ky (bf16)
    # s_ref/b_ref: (1, Cout)      folded BN scale / bias (f32)
    # o_ref:  (1, Ho*Wo, Cout)    lane-dense output slab
    # pad_ref: VMEM scratch (H+2, W+2, Cin) used to build the zero halo on-chip
    _, H, W, Cin = x_ref.shape
    Cout = w_ref.shape[-1]
    Ho = (H - 1) // stride + 1
    Wo = (W - 1) // stride + 1

    # Build the zero-padded halo in VMEM (no extra HBM pad pass in the wrapper).
    pad_ref[...] = jnp.zeros_like(pad_ref)
    pad_ref[1:H + 1, 1:W + 1, :] = x_ref[0]

    acc = jnp.zeros((Ho * Wo, Cout), jnp.float32)
    for ky in range(3):
        # Build the (Ho*Wo, 3*Cin) kx-window for this kernel row, then a single
        # K = 3*Cin MXU matmul (3 matmuls total instead of 9 small ones).
        taps = []
        for kx in range(3):
            if stride == 1:
                t = pad_ref[ky:ky + Ho, kx:kx + Wo, :]
            else:
                # Direct strided conv: no wasted FLOPs / writeback at stride 2.
                t = pad_ref[pl.ds(ky, Ho, stride), pl.ds(kx, Wo, stride), :]
            taps.append(t.reshape(Ho * Wo, Cin))
        window = jnp.concatenate(taps, axis=-1)           # (Ho*Wo, 3*Cin) bf16
        acc = acc + jnp.dot(window, w_ref[ky],
                            preferred_element_type=jnp.float32)

    y = acc * s_ref[...] + b_ref[...]
    y = jnp.maximum(y, 0.0)
    o_ref[...] = y.reshape(1, Ho * Wo, Cout).astype(o_ref.dtype)


# ------------------------------ Pallas wrappers -----------------------------

def _rowwise_call(kernel, args, row_flags, out_cols, out_dtype, *, flops):
    """Pointwise (1x1-conv-like) pallas_call tiled over the row (N*H*W) axis."""
    M = args[0].shape[0]
    tm = min(_TM, _round_up(M, 8))
    Mp = _round_up(M, tm)
    if Mp != M:  # pad row-tiled inputs up to a tile multiple
        args = [jnp.pad(a, ((0, Mp - M), (0, 0))) if r else a
                for a, r in zip(args, row_flags)]
    grid = (Mp // tm,)
    in_specs = [
        pl.BlockSpec((tm, a.shape[1]), lambda i: (i, 0)) if r
        else pl.BlockSpec(a.shape, lambda i: (0, 0))
        for a, r in zip(args, row_flags)
    ]
    bytes_accessed = int(sum(int(a.size) * a.dtype.itemsize for a in args)
                         + Mp * out_cols * jnp.dtype(out_dtype).itemsize)
    out = pl.pallas_call(
        kernel,
        out_shape=jax.ShapeDtypeStruct((Mp, out_cols), out_dtype),
        grid_spec=pltpu.PrefetchScalarGridSpec(
            num_scalar_prefetch=0,
            grid=grid,
            in_specs=in_specs,
            out_specs=pl.BlockSpec((tm, out_cols), lambda i: (i, 0))),
        compiler_params=pltpu.CompilerParams(
            dimension_semantics=("parallel",),
            vmem_limit_bytes=_VMEM_LIMIT),
        cost_estimate=pl.CostEstimate(flops=int(flops), transcendentals=0,
                                      bytes_accessed=bytes_accessed),
    )(*args)
    return out[:M] if Mp != M else out


def conv3x3_bn_relu(x_nhwc, w, scale, bias, *, stride):
    """3x3 conv (pad=1, stride) + folded BN + ReLU.  Returns (N*Ho*Wo, Cout) bf16."""
    N, H, W, Cin = x_nhwc.shape
    Cout = w.shape[-1]
    Ho = (H - 1) // stride + 1
    Wo = (W - 1) // stride + 1
    # (3, 3, Cin, Cout) -> (ky, kx*Cin, Cout): one K = 3*Cin matmul per ky.
    w_r = w.reshape(3, 3 * Cin, Cout).astype(jnp.bfloat16)
    flops = 2 * N * Ho * Wo * 9 * Cin * Cout
    bytes_accessed = int(x_nhwc.size * 2 + w_r.size * 2
                         + N * Ho * Wo * Cout * 2 + scale.size * 4 + bias.size * 4)
    out = pl.pallas_call(
        functools.partial(_conv3x3_bn_relu_kernel, stride=stride),
        out_shape=jax.ShapeDtypeStruct((N, Ho * Wo, Cout), jnp.bfloat16),
        grid_spec=pltpu.PrefetchScalarGridSpec(
            num_scalar_prefetch=0,
            grid=(N,),
            in_specs=[pl.BlockSpec((1, H, W, Cin), lambda n: (n, 0, 0, 0)),
                      pl.BlockSpec((3, 3 * Cin, Cout), lambda n: (0, 0, 0)),
                      pl.BlockSpec((1, Cout), lambda n: (0, 0)),
                      pl.BlockSpec((1, Cout), lambda n: (0, 0))],
            out_specs=pl.BlockSpec((1, Ho * Wo, Cout), lambda n: (n, 0, 0)),
            scratch_shapes=[pltpu.VMEM((H + 2, W + 2, Cin), jnp.bfloat16)]),
        compiler_params=pltpu.CompilerParams(
            dimension_semantics=("parallel",),
            vmem_limit_bytes=_VMEM_LIMIT),
        cost_estimate=pl.CostEstimate(flops=int(flops), transcendentals=0,
                                      bytes_accessed=bytes_accessed),
    )(x_nhwc, w_r, scale, bias)
    return out.reshape(N * Ho * Wo, Cout)


# ------------------------------ BottleNeck ----------------------------------

def bottleneck_forward(x_nchw, params, *, stride, has_shortcut):
    bf16 = jnp.bfloat16
    x = jnp.transpose(x_nchw, (0, 2, 3, 1)).astype(bf16)   # NHWC, bf16
    N, H, W, Cin = x.shape
    Cmid = params["w1"].shape[1]
    Cout = params["w3"].shape[1]
    M = N * H * W

    # conv1 (1x1) + bn1 + relu  -> (M, Cmid) bf16
    y1 = _rowwise_call(
        functools.partial(_pw_bn_kernel, relu=True),
        [x.reshape(M, Cin), params["w1"].astype(bf16), params["s1"], params["b1"]],
        [True, False, False, False],
        Cmid, bf16, flops=2 * M * Cin * Cmid)

    # conv2 (3x3, pad=1, stride) + bn2 + relu  -> (M2, Cmid) bf16
    y2 = conv3x3_bn_relu(y1.reshape(N, H, W, Cmid),
                         params["w2"], params["s2"], params["b2"], stride=stride)
    Ho = (H - 1) // stride + 1
    Wo = (W - 1) // stride + 1
    M2 = N * Ho * Wo

    # conv3 (1x1) + bn3 + shortcut + residual add + relu, fused -> (M2, Cout) f32
    if has_shortcut:
        xs = x if stride == 1 else x[:, ::stride, ::stride, :]
        out2d = _rowwise_call(
            _pw_bn_add_proj_kernel,
            [y2, params["w3"].astype(bf16), params["s3"], params["b3"],
             xs.reshape(M2, Cin), params["ws"].astype(bf16),
             params["ss"], params["bs"]],
            [True, False, False, False, True, False, False, False],
            Cout, jnp.float32,
            flops=2 * M2 * Cmid * Cout + 2 * M2 * Cin * Cout)
    else:
        assert stride == 1 and Cin == Cout, "identity shortcut needs matching shapes"
        out2d = _rowwise_call(
            _pw_bn_add_identity_kernel,
            [y2, params["w3"].astype(bf16), params["s3"], params["b3"],
             x.reshape(M2, Cout)],
            [True, False, False, False, True],
            Cout, jnp.float32, flops=2 * M2 * Cmid * Cout)

    out = out2d.reshape(N, Ho, Wo, Cout)
    return jnp.transpose(out, (0, 3, 1, 2))   # back to NCHW, f32


# ------------------------------ JAX reference --------------------------------

def reference_forward(x_nchw, params, *, stride, has_shortcut):
    f32 = jnp.float32

    def q(a):  # round-trip through bf16 to match the kernel's MXU inputs
        return a.astype(jnp.bfloat16).astype(f32)

    x = q(jnp.transpose(x_nchw, (0, 2, 3, 1)).astype(f32))
    dn = ("NHWC", "HWIO", "NHWC")

    def bn(y, s, b):
        return y * s.reshape(1, 1, 1, -1) + b.reshape(1, 1, 1, -1)

    def conv1x1(y, w, strides):
        return lax.conv_general_dilated(y, q(w).reshape(1, 1, *w.shape), strides,
                                        "VALID", dimension_numbers=dn)

    y = jnp.maximum(bn(conv1x1(x, params["w1"], (1, 1)),
                       params["s1"], params["b1"]), 0.0)
    y = q(y)
    y = lax.conv_general_dilated(y, q(params["w2"]), (stride, stride),
                                 ((1, 1), (1, 1)), dimension_numbers=dn)
    y = jnp.maximum(bn(y, params["s2"], params["b2"]), 0.0)
    y = q(y)
    res = bn(conv1x1(y, params["w3"], (1, 1)), params["s3"], params["b3"])
    if has_shortcut:
        sc = bn(conv1x1(x, params["ws"], (stride, stride)),
                params["ss"], params["bs"])
    else:
        sc = x
    out = jnp.maximum(res + sc, 0.0)
    return jnp.transpose(out, (0, 3, 1, 2))


# ------------------------------ parameter init -------------------------------

def make_bn(key, c, eps=1e-5):
    k1, k2, k3, k4 = jax.random.split(key, 4)
    gamma = 1.0 + 0.1 * jax.random.normal(k1, (c,), jnp.float32)
    beta = 0.1 * jax.random.normal(k2, (c,), jnp.float32)
    mean = 0.1 * jax.random.normal(k3, (c,), jnp.float32)
    var = 0.5 + jnp.abs(jax.random.normal(k4, (c,), jnp.float32)) * 0.5
    scale = gamma / jnp.sqrt(var + eps)
    bias = beta - mean * scale
    return scale.reshape(1, c), bias.reshape(1, c)


def make_params(key, in_channels, out_channels, expansion=4):
    cmid = out_channels
    cout = out_channels * expansion
    keys = jax.random.split(key, 8)
    p = {}
    p["w1"] = 0.1 * jax.random.normal(keys[0], (in_channels, cmid), jnp.float32)
    p["s1"], p["b1"] = make_bn(keys[1], cmid)
    p["w2"] = 0.1 * jax.random.normal(keys[2], (3, 3, cmid, cmid), jnp.float32)
    p["s2"], p["b2"] = make_bn(keys[3], cmid)
    p["w3"] = 0.1 * jax.random.normal(keys[4], (cmid, cout), jnp.float32)
    p["s3"], p["b3"] = make_bn(keys[5], cout)
    p["ws"] = 0.1 * jax.random.normal(keys[6], (in_channels, cout), jnp.float32)
    p["ss"], p["bs"] = make_bn(keys[7], cout)
    return p


# ----------------------------------- main ------------------------------------

if __name__ == "__main__":
    key = jax.random.PRNGKey(0)
    N, H, W = 2, 32, 32
    expansion = 4

    configs = [
        # (in_channels, out_channels, stride)
        (64, 32, 1),    # projection shortcut (64 != 32*4), Cout = 128 lane-dense
        (128, 32, 1),   # identity shortcut (128 == 32*4)
    ]
    for idx, (cin, cmid, stride) in enumerate(configs):
        kx, kp, key = jax.random.split(key, 3)
        has_shortcut = (stride != 1) or (cin != cmid * expansion)
        x = jax.random.normal(kx, (N, cin, H, W), jnp.float32)   # NCHW input
        params = make_params(kp, cin, cmid, expansion)

        out = bottleneck_forward(x, params, stride=stride,
                                 has_shortcut=has_shortcut)
        out = jax.block_until_ready(out)
        ref = reference_forward(x, params, stride=stride,
                                has_shortcut=has_shortcut)

        Ho = (H - 1) // stride + 1
        Wo = (W - 1) // stride + 1
        assert out.shape == (N, cmid * expansion, Ho, Wo)
        assert jnp.allclose(out, ref, rtol=1e-2, atol=1e-2), (
            f"mismatch vs reference for config {idx}: "
            f"max abs err {jnp.max(jnp.abs(out - ref))}")

    print("KERNEL_OK")
</pallas_src>

<mosaic_0001>
module attributes {stable_mosaic.version = 11 : i64} {
  func.func @_pw_bn_kernel(%arg0: i32, %arg1: memref<512x64xbf16, #tpu.memory_space<vmem>>, %arg2: memref<64x32xbf16, #tpu.memory_space<vmem>>, %arg3: memref<1x32xf32, #tpu.memory_space<vmem>>, %arg4: memref<1x32xf32, #tpu.memory_space<vmem>>, %arg5: memref<512x32xbf16, #tpu.memory_space<vmem>>) attributes {dimension_semantics = [#tpu.dimension_semantics<parallel>], iteration_bounds = array<i64: 4>, scalar_prefetch = 0 : i64, scratch_operands = 0 : i64, tpu.core_type = #tpu.core_type<tc>, window_params = [{transform_indices = @transform_0, window_bounds = array<i64: 512, 64>}, {pipeline_mode = #tpu.pipeline_mode<synchronous>, transform_indices = @transform_1, window_bounds = array<i64: 64, 32>}, {pipeline_mode = #tpu.pipeline_mode<synchronous>, transform_indices = @transform_2, window_bounds = array<i64: 1, 32>}, {pipeline_mode = #tpu.pipeline_mode<synchronous>, transform_indices = @transform_3, window_bounds = array<i64: 1, 32>}, {transform_indices = @transform_4, window_bounds = array<i64: 512, 32>}]} {
    %c0 = arith.constant 0 : index
    %c0_0 = arith.constant 0 : index
    %0 = vector.load %arg1[%c0, %c0_0] : memref<512x64xbf16, #tpu.memory_space<vmem>>, vector<512x64xbf16>
    %c0_1 = arith.constant 0 : index
    %c0_2 = arith.constant 0 : index
    %1 = vector.load %arg2[%c0_1, %c0_2] : memref<64x32xbf16, #tpu.memory_space<vmem>>, vector<64x32xbf16>
    %cst = arith.constant dense<0.000000e+00> : vector<512x32xf32>
    %2 = tpu.matmul %0, %1, %cst {dimension_numbers = #tpu.dot_dimension_numbers<[1], [0], [0], [1], [0, 0, 1, 1], [], []>} : vector<512x64xbf16>, vector<64x32xbf16>, vector<512x32xf32> -> vector<512x32xf32>
    %c0_3 = arith.constant 0 : index
    %c0_4 = arith.constant 0 : index
    %3 = vector.load %arg3[%c0_3, %c0_4] : memref<1x32xf32, #tpu.memory_space<vmem>>, vector<1x32xf32>
    %4 = vector.broadcast %3 : vector<1x32xf32> to vector<512x32xf32>
    %5 = arith.mulf %2, %4 : vector<512x32xf32>
    %c0_5 = arith.constant 0 : index
    %c0_6 = arith.constant 0 : index
    %6 = vector.load %arg4[%c0_5, %c0_6] : memref<1x32xf32, #tpu.memory_space<vmem>>, vector<1x32xf32>
    %7 = vector.broadcast %6 : vector<1x32xf32> to vector<512x32xf32>
    %8 = arith.addf %5, %7 : vector<512x32xf32>
    %cst_7 = arith.constant 0.000000e+00 : f32
    %9 = vector.broadcast %cst_7 : f32 to vector<512x32xf32>
    %10 = arith.maximumf %8, %9 : vector<512x32xf32>
    %11 = arith.truncf %10 : vector<512x32xf32> to vector<512x32xbf16>
    %c0_8 = arith.constant 0 : index
    %c0_9 = arith.constant 0 : index
    %12 = vector.load %arg5[%c0_8, %c0_9] : memref<512x32xbf16, #tpu.memory_space<vmem>>, vector<512x32xbf16>
    tpu.vector_store %arg5[%c0_8, %c0_9], %11 {strides = array<i32>} : memref<512x32xbf16, #tpu.memory_space<vmem>>, vector<512x32xbf16>,
    return
  }
  func.func @transform_0(%arg0: i32) -> (i32, i32) {
    %c0_i32 = arith.constant 0 : i32
    %c0_i32_0 = arith.constant 0 : i32
    return %arg0, %c0_i32 : i32, i32
  }
  func.func @transform_1(%arg0: i32) -> (i32, i32) {
    %c0_i32 = arith.constant 0 : i32
    %c0_i32_0 = arith.constant 0 : i32
    %c0_i32_1 = arith.constant 0 : i32
    return %c0_i32, %c0_i32_0 : i32, i32
  }
  func.func @transform_2(%arg0: i32) -> (i32, i32) {
    %c0_i32 = arith.constant 0 : i32
    %c0_i32_0 = arith.constant 0 : i32
    %c0_i32_1 = arith.constant 0 : i32
    return %c0_i32, %c0_i32_0 : i32, i32
  }
  func.func @transform_3(%arg0: i32) -> (i32, i32) {
    %c0_i32 = arith.constant 0 : i32
    %c0_i32_0 = arith.constant 0 : i32
    %c0_i32_1 = arith.constant 0 : i32
    return %c0_i32, %c0_i32_0 : i32, i32
  }
  func.func @transform_4(%arg0: i32) -> (i32, i32) {
    %c0_i32 = arith.constant 0 : i32
    %c0_i32_0 = arith.constant 0 : i32
    return %arg0, %c0_i32 : i32, i32
  }
}

</mosaic_0001>

<bundles_post_ra>
// kernel: tpu_custom_call.1
= control target key start
LH: loop header
LB: loop body
LE: loop exit
PB: predicated region body
PF: predicated region fallthrough
CT: control target
= control target key end

     0   :  { %s1829_s15 = smov 0   ;;  %s2199_s0 = inlined_call_operand.vmem [shape: bf16[2048,64], index: 0, kind: input, shape index: {}]   ;;  %s2200_s1 = inlined_call_operand.vmem [shape: bf16[64,32], index: 1, kind: input, shape index: {}]   ;;  %s2201_s2 = inlined_call_operand.vmem [shape: f32[1,32], index: 2, kind: input, shape index: {}]   ;;  %s2202_s3 = inlined_call_operand.vmem [shape: f32[1,32], index: 3, kind: input, shape index: {}]   ;;  %s2203_s4 = inlined_call_operand.vmem [shape: bf16[2048,32], index: 4, kind: output, shape index: {}]  }
   0x1 LB: > { %s1427_s16 = sadd.s32 4294967295, %s1802_s15   ;;  %p1431_p0 = scmp.ge.s32.totalorder %s1802_s15, 1  ;;  %s1802_s15 = sphi %s1829_s15, %s14_s15  }
   0x2   : > { %p163_p1 = scmp.lt.s32.totalorder %s1802_s15, 5 }
   0x4   : > { %p164_p2 = pnand %p1431_p0, %p163_p1 }
   0x5   : > { %v1760_v0 = vld [vmem:[%s2200_s1] sm:$0xff] (!%p164_p2)   ;;  %s1432_s19 = sshll.u32 (!%p164_p2), %s1427_s16, 6  ;;  %v1761_v1 = vld [vmem:[%s2200_s1 + $0x8] sm:$0xff] (!%p164_p2)   ;;  %v1762_v2 = vld [vmem:[%s2200_s1 + $0x10] sm:$0xff] (!%p164_p2)   ;;  %vm458_vm0 = vcmask (!%p164_p2), 523264   ;;  %vm1306_vm1 = vcmask (!%p164_p2), 257024  }
   0x6   : > { %167 = sbr.rel (%p164_p2) target bundleno = 309 (0x135), region = 36  ;;  %p190_p3 = scmp.lt.s32.totalorder (!%p164_p2), %s1432_s19, 255  ;;  %1672 = vmatprep.subr.bf16.mxu0 (!%p164_p2), %v1760_v0  ;;  %1744 = vmatprep.subr.bf16.mxu1 (!%p164_p2), %v1760_v0  ;;  %v1763_v3 = vld [vmem:[%s2200_s1 + $0x18] sm:$0xff] (!%p164_p2)   ;;  %v1926_v36 = vld [vmem:[%s2201_s2] ss:$0 sm:$0xff] (!%p164_p2) }
   0x7   : > { %1673 = vmatpush3.bf16.msra.mxu0 (!%p164_p2), %v1760_v0  ;;  %1748 = vmatpush3.bf16.msra.mxu1 (!%p164_p2), %v1760_v0  ;;  %v1931_v38 = vld [vmem:[%s2202_s3] ss:$0 sm:$0xff] (!%p164_p2) }
   0x8   : > { %1674 = vmatprep.subr.bf16.mxu0 (!%p164_p2), %v1761_v1  ;;  %1745 = vmatprep.subr.bf16.mxu1 (!%p164_p2), %v1761_v1 }
   0xb   : > { %1675 = vmatpush3.bf16.msra.mxu0 (!%p164_p2), %v1761_v1  ;;  %1749 = vmatpush3.bf16.msra.mxu1 (!%p164_p2), %v1761_v1 }
   0xc   : > { %1676 = vmatprep.subr.bf16.mxu0 (!%p164_p2), %v1762_v2  ;;  %1746 = vmatprep.subr.bf16.mxu1 (!%p164_p2), %v1762_v2 }
   0xd   : > { %s2205_s19 = smov (!%p190_p3, %s1432_s19), 255 }
   0xe   : > { %s1433_s24 = sshll.u32 %s2205_s19, 2 }
   0xf   : > { %s1857_s29 = scalar_lea.vmem %s2199_s0, %s1433_s24  ;;  %1677 = vmatpush3.bf16.msra.mxu0 %v1762_v2  ;;  %1750 = vmatpush3.bf16.msra.mxu1 %v1762_v2  ;;  %s1952_s10 = scalar_lea.vmem %s2203_s4, %s1433_s24 }
  0x10   : > { %v1764_v4 = vld [vmem:[%s1857_s29] sm:$0xff]   ;;  %1678 = vmatprep.subr.bf16.mxu0 %v1763_v3  ;;  %1747 = vmatprep.subr.bf16.mxu1 %v1763_v3  ;;  %v1766_v6 = vld [vmem:[%s1857_s29 + $0x8] sm:$0xff]   ;;  %v1768_v8 = vld [vmem:[%s1857_s29 + $0x10] sm:$0xff]  }
  0x11   : > { %v1765_v5 = vld [vmem:[%s1857_s29 + $0x80] sm:$0xff]   ;;  %1680 = vmatprep.mubr.msk.bf16.mxu0 %vm458_vm0, %v1764_v4  ;;  %v1767_v7 = vld [vmem:[%s1857_s29 + $0x88] sm:$0xff]   ;;  %v1769_v9 = vld [vmem:[%s1857_s29 + $0x90] sm:$0xff]  }
  0x12   : > { %1712 = vmatprep.mubr.msk.bf16.mxu1 %vm458_vm0, %v1765_v5  ;;  %v1770_v10 = vld [vmem:[%s1857_s29 + $0x18] sm:$0xff]   ;;  %v1772_v12 = vld [vmem:[%s1857_s29 + $0x20] sm:$0xff]   ;;  %v1774_v14 = vld [vmem:[%s1857_s29 + $0x28] sm:$0xff]  }
  0x13   : > { %1679 = vmatpush3.bf16.msra.mxu0 %v1763_v3  ;;  %1751 = vmatpush3.bf16.msra.mxu1 %v1763_v3  ;;  %v1771_v11 = vld [vmem:[%s1857_s29 + $0x98] sm:$0xff]   ;;  %v1773_v13 = vld [vmem:[%s1857_s29 + $0xa0] sm:$0xff]   ;;  %v1775_v15 = vld [vmem:[%s1857_s29 + $0xa8] sm:$0xff]  }
  0x14   : > { %v1776_v16 = vld [vmem:[%s1857_s29 + $0x30] sm:$0xff]   ;;  %v1778_v18 = vld [vmem:[%s1857_s29 + $0x38] sm:$0xff]   ;;  %v1780_v20 = vld [vmem:[%s1857_s29 + $0x40] sm:$0xff]  }
  0x15   : > { %v1777_v17 = vld [vmem:[%s1857_s29 + $0xb0] sm:$0xff]   ;;  %v1779_v19 = vld [vmem:[%s1857_s29 + $0xb8] sm:$0xff]   ;;  %v1781_v21 = vld [vmem:[%s1857_s29 + $0xc0] sm:$0xff]  }
  0x16   : > { %1681 = vmatmul.mubr.msk.bf16.vlgmr.msra.gmra.mrb[0].mxu0 %vm458_vm0, %v1766_v6  ;;  %1713 = vmatmul.mubr.msk.bf16.vlgmr.msra.gmra.mrb[0].mxu1 %vm458_vm0, %v1767_v7  ;;  %v1782_v22 = vld [vmem:[%s1857_s29 + $0x48] sm:$0xff]   ;;  %v1784_v24 = vld [vmem:[%s1857_s29 + $0x50] sm:$0xff]   ;;  %v1786_v26 = vld [vmem:[%s1857_s29 + $0x58] sm:$0xff]  }
  0x17   : > { %1684 = vmatprep.mubr.msk.bf16.mxu0 %vm458_vm0, %v1768_v8  ;;  %1716 = vmatprep.mubr.msk.bf16.mxu1 %vm458_vm0, %v1769_v9  ;;  %v1783_v23 = vld [vmem:[%s1857_s29 + $0xc8] sm:$0xff]   ;;  %v1785_v25 = vld [vmem:[%s1857_s29 + $0xd0] sm:$0xff]   ;;  %v1787_v27 = vld [vmem:[%s1857_s29 + $0xd8] sm:$0xff]  }
  0x18   : > { %v1788_v28 = vld [vmem:[%s1857_s29 + $0x60] sm:$0xff]   ;;  %v1790_v30 = vld [vmem:[%s1857_s29 + $0x68] sm:$0xff]   ;;  %v1792_v32 = vld [vmem:[%s1857_s29 + $0x70] sm:$0xff]  }
  0x19   : > { %v1789_v29 = vld [vmem:[%s1857_s29 + $0xe0] sm:$0xff]   ;;  %v1791_v31 = vld [vmem:[%s1857_s29 + $0xe8] sm:$0xff]   ;;  %v1793_v33 = vld [vmem:[%s1857_s29 + $0xf0] sm:$0xff]  }
  0x1a   : > { %v1794_v34 = vld [vmem:[%s1857_s29 + $0x78] sm:$0xff]  }
  0x1b   : > { %v1795_v35 = vld [vmem:[%s1857_s29 + $0xf8] sm:$0xff]  }
  0x1e   : > { %1685 = vmatmul.mubr.msk.bf16.gmra.mrb[4].mxu0 %vm458_vm0, %v1770_v10  ;;  %1717 = vmatmul.mubr.msk.bf16.gmra.mrb[4].mxu1 %vm458_vm0, %v1771_v11 }
  0x1f   : > { %1688 = vmatprep.mubr.msk.bf16.mxu0 %vm458_vm0, %v1772_v12  ;;  %1720 = vmatprep.mubr.msk.bf16.mxu1 %vm458_vm0, %v1773_v13 }
  0x26   : > { %1689 = vmatmul.mubr.msk.bf16.gmra.mrb[8].mxu0 %vm458_vm0, %v1774_v14  ;;  %1721 = vmatmul.mubr.msk.bf16.gmra.mrb[8].mxu1 %vm458_vm0, %v1775_v15 }
  0x27   : > { %1692 = vmatprep.mubr.msk.bf16.mxu0 %vm458_vm0, %v1776_v16  ;;  %1724 = vmatprep.mubr.msk.bf16.mxu1 %vm458_vm0, %v1777_v17 }
  0x2e   : > { %1693 = vmatmul.mubr.msk.bf16.gmra.mrb[12].mxu0 %vm458_vm0, %v1778_v18  ;;  %1725 = vmatmul.mubr.msk.bf16.gmra.mrb[12].mxu1 %vm458_vm0, %v1779_v19 }
  0x2f   : > { %1696 = vmatprep.mubr.msk.bf16.mxu0 %vm458_vm0, %v1780_v20  ;;  %1728 = vmatprep.mubr.msk.bf16.mxu1 %vm458_vm0, %v1781_v21 }
  0x36   : > { %1697 = vmatmul.mubr.msk.bf16.gmra.mrb[16].mxu0 %vm458_vm0, %v1782_v22  ;;  %1729 = vmatmul.mubr.msk.bf16.gmra.mrb[16].mxu1 %vm458_vm0, %v1783_v23 }
  0x37   : > { %1700 = vmatprep.mubr.msk.bf16.mxu0 %vm458_vm0, %v1784_v24  ;;  %1732 = vmatprep.mubr.msk.bf16.mxu1 %vm458_vm0, %v1785_v25 }
  0x3e   : > { %1701 = vmatmul.mubr.msk.bf16.gmra.mrb[20].mxu0 %vm458_vm0, %v1786_v26  ;;  %1733 = vmatmul.mubr.msk.bf16.gmra.mrb[20].mxu1 %vm458_vm0, %v1787_v27 }
  0x3f   : > { %1704 = vmatprep.mubr.msk.bf16.mxu0 %vm458_vm0, %v1788_v28  ;;  %1736 = vmatprep.mubr.msk.bf16.mxu1 %vm458_vm0, %v1789_v29 }
  0x46   : > { %1705 = vmatmul.mubr.msk.bf16.gmra.mrb[24].mxu0 %vm458_vm0, %v1790_v30  ;;  %1737 = vmatmul.mubr.msk.bf16.gmra.mrb[24].mxu1 %vm458_vm0, %v1791_v31 }
  0x47   : > { %1708 = vmatprep.mubr.msk.bf16.mxu0 %vm458_vm0, %v1792_v32  ;;  %1740 = vmatprep.mubr.msk.bf16.mxu1 %vm458_vm0, %v1793_v33 }
  0x4e   : > { %1709 = vmatmul.mubr.msk.bf16.gmra.mrb[28].mxu0 %vm458_vm0, %v1794_v34  ;;  %1741 = vmatmul.mubr.msk.bf16.gmra.mrb[28].mxu1 %vm458_vm0, %v1795_v35 }
  0xe9   : > { %v1682_v37 = vpop.f32.mrb[0].mxu0  ;;  %v1714_v39 = vpop.f32.mrb[0].mxu1 }
  0xea   : > { %v853_v40 = vmul.f32 %v1682_v37, %v1926_v36  ;;  %v885_v41 = vmul.f32 %v1714_v39, %v1926_v36  ;;  %v589_v42 = vpop.f32.mrb[1].mxu0  ;;  %v717_v43 = vpop.f32.mrb[1].mxu1 }
  0xeb   : > { %v851_v44 = vmul.f32 %v1926_v36, %v589_v42  ;;  %v883_v45 = vmul.f32 %v1926_v36, %v717_v43  ;;  %v1683_v46 = vpop.f32.mrb[2].mxu0  ;;  %v1715_v47 = vpop.f32.mrb[2].mxu1 }
  0xec   : > { %v924_v48 = vadd.f32 %v1931_v38, %v853_v40  ;;  %v956_v49 = vadd.f32 %v1931_v38, %v885_v41  ;;  %v854_v50 = vmul.f32 %v1683_v46, %v1926_v36  ;;  %v886_v51 = vmul.f32 %v1715_v47, %v1926_v36  ;;  %v592_v52 = vpop.f32.mrb[3].mxu0  ;;  %v720_v53 = vpop.f32.mrb[3].mxu1 }
  0xed   : > { %v922_v54 = vadd.f32 %v1931_v38, %v851_v44  ;;  %v954_v55 = vadd.f32 %v1931_v38, %v883_v45  ;;  %v852_v56 = vmul.f32 %v1926_v36, %v592_v52  ;;  %v884_v57 = vmul.f32 %v1926_v36, %v720_v53 }
  0xee   : > { %v988_v58 = vmax.f32 %v924_v48, 0.0  ;;  %v1020_v59 = vmax.f32 %v956_v49, 0.0  ;;  %v925_v60 = vadd.f32 %v1931_v38, %v854_v50  ;;  %v957_v61 = vadd.f32 %v1931_v38, %v886_v51 }
  0xef   : > { %v986_v62 = vmax.f32 %v922_v54, 0.0  ;;  %v1018_v63 = vmax.f32 %v954_v55, 0.0  ;;  %v923_v0 = vadd.f32 %v1931_v38, %v852_v56  ;;  %v955_v1 = vadd.f32 %v1931_v38, %v884_v57 }
  0xf0   : > { %v1574_v2 = vpack.c.bf16 %v988_v58, %v988_v58  ;;  %v1606_v3 = vpack.c.bf16 %v1020_v59, %v1020_v59  ;;  %v989_v4 = vmax.f32 %v925_v60, 0.0  ;;  %v1021_v5 = vmax.f32 %v957_v61, 0.0 }
  0xf1   : > { %v1572_v6 = vpack.c.bf16 %v986_v62, %v986_v62  ;;  %v1604_v7 = vpack.c.bf16 %v1018_v63, %v1018_v63  ;;  %v987_v8 = vmax.f32 %v923_v0, 0.0  ;;  %v1019_v9 = vmax.f32 %v955_v1, 0.0  ;;  %v1686_v10 = vpop.f32.mrb[4].mxu0  ;;  %v1718_v11 = vpop.f32.mrb[4].mxu1 }
  0xf2   : > { %1309 = vst.msk [vmem:[%s1952_s10 + $0x8] sm:$0xf] %vm1306_vm1, %v1574_v2  ;;  %1341 = vst.msk [vmem:[%s1952_s10 + $0x88] sm:$0xf] %vm1306_vm1, %v1606_v3  ;;  %v1575_v12 = vpack.c.bf16 %v989_v4, %v989_v4  ;;  %v1607_v13 = vpack.c.bf16 %v1021_v5, %v1021_v5  ;;  %v857_v14 = vmul.f32 %v1686_v10, %v1926_v36  ;;  %v605_v16 = vpop.f32.mrb[5].mxu0  ;;  %v733_v17 = vpop.f32.mrb[5].mxu1 }
  0xf3   : > { %v889_v15 = vmul.f32 %v1718_v11, %v1926_v36  ;;  %1307 = vst.msk [vmem:[%s1952_s10] sm:$0xf] %vm1306_vm1, %v1572_v6  ;;  %1339 = vst.msk [vmem:[%s1952_s10 + $0x80] sm:$0xf] %vm1306_vm1, %v1604_v7  ;;  %v1573_v18 = vpack.c.bf16 %v987_v8, %v987_v8  ;;  %v1605_v19 = vpack.c.bf16 %v1019_v9, %v1019_v9  ;;  %v1687_v22 = vpop.f32.mrb[6].mxu0  ;;  %v1719_v23 = vpop.f32.mrb[6].mxu1 }
  0xf4   : > { %v855_v20 = vmul.f32 %v1926_v36, %v605_v16  ;;  %v887_v21 = vmul.f32 %v1926_v36, %v733_v17  ;;  %1310 = vst.msk [vmem:[%s1952_s10 + $0xc] sm:$0xf] %vm1306_vm1, %v1575_v12  ;;  %1342 = vst.msk [vmem:[%s1952_s10 + $0x8c] sm:$0xf] %vm1306_vm1, %v1607_v13  ;;  %v928_v24 = vadd.f32 %v1931_v38, %v857_v14  ;;  %v608_v28 = vpop.f32.mrb[7].mxu0  ;;  %v736_v29 = vpop.f32.mrb[7].mxu1 }
  0xf5   : > { %v960_v25 = vadd.f32 %v1931_v38, %v889_v15  ;;  %v858_v26 = vmul.f32 %v1687_v22, %v1926_v36  ;;  %v890_v27 = vmul.f32 %v1719_v23, %v1926_v36  ;;  %1308 = vst.msk [vmem:[%s1952_s10 + $0x4] sm:$0xf] %vm1306_vm1, %v1573_v18  ;;  %1340 = vst.msk [vmem:[%s1952_s10 + $0x84] sm:$0xf] %vm1306_vm1, %v1605_v19 }
  0xf6   : > { %v926_v30 = vadd.f32 %v1931_v38, %v855_v20  ;;  %v958_v31 = vadd.f32 %v1931_v38, %v887_v21  ;;  %v856_v32 = vmul.f32 %v1926_v36, %v608_v28  ;;  %v888_v33 = vmul.f32 %v1926_v36, %v736_v29 }
  0xf7   : > { %v992_v34 = vmax.f32 %v928_v24, 0.0  ;;  %v1024_v35 = vmax.f32 %v960_v25, 0.0  ;;  %v929_v37 = vadd.f32 %v1931_v38, %v858_v26  ;;  %v961_v39 = vadd.f32 %v1931_v38, %v890_v27 }
  0xf8   : > { %v990_v40 = vmax.f32 %v926_v30, 0.0  ;;  %v1022_v41 = vmax.f32 %v958_v31, 0.0  ;;  %v927_v42 = vadd.f32 %v1931_v38, %v856_v32  ;;  %v959_v43 = vadd.f32 %v1931_v38, %v888_v33 }
  0xf9   : > { %v1578_v44 = vpack.c.bf16 %v992_v34, %v992_v34  ;;  %v1610_v45 = vpack.c.bf16 %v1024_v35, %v1024_v35  ;;  %v993_v46 = vmax.f32 %v929_v37, 0.0  ;;  %v1025_v47 = vmax.f32 %v961_v39, 0.0  ;;  %v1690_v52 = vpop.f32.mrb[8].mxu0  ;;  %v1722_v53 = vpop.f32.mrb[8].mxu1 }
  0xfa   : > { %v1576_v48 = vpack.c.bf16 %v990_v40, %v990_v40  ;;  %v1608_v49 = vpack.c.bf16 %v1022_v41, %v1022_v41  ;;  %v991_v50 = vmax.f32 %v927_v42, 0.0  ;;  %v1023_v51 = vmax.f32 %v959_v43, 0.0  ;;  %v621_v58 = vpop.f32.mrb[9].mxu0  ;;  %v749_v59 = vpop.f32.mrb[9].mxu1 }
  0xfb   : > { %1313 = vst.msk [vmem:[%s1952_s10 + $0x18] sm:$0xf] %vm1306_vm1, %v1578_v44  ;;  %1345 = vst.msk [vmem:[%s1952_s10 + $0x98] sm:$0xf] %vm1306_vm1, %v1610_v45  ;;  %v1579_v54 = vpack.c.bf16 %v993_v46, %v993_v46  ;;  %v1611_v55 = vpack.c.bf16 %v1025_v47, %v1025_v47  ;;  %v861_v56 = vmul.f32 %v1690_v52, %v1926_v36  ;;  %v1691_v0 = vpop.f32.mrb[10].mxu0  ;;  %v1723_v1 = vpop.f32.mrb[10].mxu1 }
  0xfc   : > { %v893_v57 = vmul.f32 %v1722_v53, %v1926_v36  ;;  %1311 = vst.msk [vmem:[%s1952_s10 + $0x10] sm:$0xf] %vm1306_vm1, %v1576_v48  ;;  %1343 = vst.msk [vmem:[%s1952_s10 + $0x90] sm:$0xf] %vm1306_vm1, %v1608_v49  ;;  %v1577_v60 = vpack.c.bf16 %v991_v50, %v991_v50  ;;  %v1609_v61 = vpack.c.bf16 %v1023_v51, %v1023_v51  ;;  %v624_v6 = vpop.f32.mrb[11].mxu0  ;;  %v752_v7 = vpop.f32.mrb[11].mxu1 }
  0xfd   : > { %v859_v62 = vmul.f32 %v1926_v36, %v621_v58  ;;  %v891_v63 = vmul.f32 %v1926_v36, %v749_v59  ;;  %1314 = vst.msk [vmem:[%s1952_s10 + $0x1c] sm:$0xf] %vm1306_vm1, %v1579_v54  ;;  %1346 = vst.msk [vmem:[%s1952_s10 + $0x9c] sm:$0xf] %vm1306_vm1, %v1611_v55  ;;  %v932_v2 = vadd.f32 %v1931_v38, %v861_v56 }
  0xfe   : > { %v964_v3 = vadd.f32 %v1931_v38, %v893_v57  ;;  %v862_v4 = vmul.f32 %v1691_v0, %v1926_v36  ;;  %v894_v5 = vmul.f32 %v1723_v1, %v1926_v36  ;;  %1312 = vst.msk [vmem:[%s1952_s10 + $0x14] sm:$0xf] %vm1306_vm1, %v1577_v60  ;;  %1344 = vst.msk [vmem:[%s1952_s10 + $0x94] sm:$0xf] %vm1306_vm1, %v1609_v61 }
  0xff   : > { %v930_v8 = vadd.f32 %v1931_v38, %v859_v62  ;;  %v962_v9 = vadd.f32 %v1931_v38, %v891_v63  ;;  %v860_v10 = vmul.f32 %v1926_v36, %v624_v6  ;;  %v892_v11 = vmul.f32 %v1926_v36, %v752_v7 }
 0x100   : > { %v996_v12 = vmax.f32 %v932_v2, 0.0  ;;  %v1028_v13 = vmax.f32 %v964_v3, 0.0  ;;  %v933_v14 = vadd.f32 %v1931_v38, %v862_v4  ;;  %v965_v15 = vadd.f32 %v1931_v38, %v894_v5 }
 0x101   : > { %v994_v16 = vmax.f32 %v930_v8, 0.0  ;;  %v1026_v17 = vmax.f32 %v962_v9, 0.0  ;;  %v931_v18 = vadd.f32 %v1931_v38, %v860_v10  ;;  %v963_v19 = vadd.f32 %v1931_v38, %v892_v11  ;;  %v1694_v28 = vpop.f32.mrb[12].mxu0  ;;  %v1726_v29 = vpop.f32.mrb[12].mxu1 }
 0x102   : > { %v1582_v20 = vpack.c.bf16 %v996_v12, %v996_v12  ;;  %v1614_v21 = vpack.c.bf16 %v1028_v13, %v1028_v13  ;;  %v997_v22 = vmax.f32 %v933_v14, 0.0  ;;  %v1029_v23 = vmax.f32 %v965_v15, 0.0  ;;  %v637_v34 = vpop.f32.mrb[13].mxu0  ;;  %v765_v35 = vpop.f32.mrb[13].mxu1 }
 0x103   : > { %v1580_v24 = vpack.c.bf16 %v994_v16, %v994_v16  ;;  %v1612_v25 = vpack.c.bf16 %v1026_v17, %v1026_v17  ;;  %v995_v26 = vmax.f32 %v931_v18, 0.0  ;;  %v1027_v27 = vmax.f32 %v963_v19, 0.0  ;;  %v1695_v42 = vpop.f32.mrb[14].mxu0  ;;  %v1727_v43 = vpop.f32.mrb[14].mxu1 }
 0x104   : > { %1317 = vst.msk [vmem:[%s1952_s10 + $0x28] sm:$0xf] %vm1306_vm1, %v1582_v20  ;;  %1349 = vst.msk [vmem:[%s1952_s10 + $0xa8] sm:$0xf] %vm1306_vm1, %v1614_v21  ;;  %v1583_v30 = vpack.c.bf16 %v997_v22, %v997_v22  ;;  %v1615_v31 = vpack.c.bf16 %v1029_v23, %v1029_v23  ;;  %v865_v32 = vmul.f32 %v1694_v28, %v1926_v36  ;;  %v640_v48 = vpop.f32.mrb[15].mxu0  ;;  %v768_v49 = vpop.f32.mrb[15].mxu1 }
 0x105   : > { %v897_v33 = vmul.f32 %v1726_v29, %v1926_v36  ;;  %1315 = vst.msk [vmem:[%s1952_s10 + $0x20] sm:$0xf] %vm1306_vm1, %v1580_v24  ;;  %1347 = vst.msk [vmem:[%s1952_s10 + $0xa0] sm:$0xf] %vm1306_vm1, %v1612_v25  ;;  %v1581_v37 = vpack.c.bf16 %v995_v26, %v995_v26  ;;  %v1613_v39 = vpack.c.bf16 %v1027_v27, %v1027_v27 }
 0x106   : > { %v863_v40 = vmul.f32 %v1926_v36, %v637_v34  ;;  %v895_v41 = vmul.f32 %v1926_v36, %v765_v35  ;;  %1318 = vst.msk [vmem:[%s1952_s10 + $0x2c] sm:$0xf] %vm1306_vm1, %v1583_v30  ;;  %1350 = vst.msk [vmem:[%s1952_s10 + $0xac] sm:$0xf] %vm1306_vm1, %v1615_v31  ;;  %v936_v44 = vadd.f32 %v1931_v38, %v865_v32 }
 0x107   : > { %v968_v45 = vadd.f32 %v1931_v38, %v897_v33  ;;  %v866_v46 = vmul.f32 %v1695_v42, %v1926_v36  ;;  %v898_v47 = vmul.f32 %v1727_v43, %v1926_v36  ;;  %1316 = vst.msk [vmem:[%s1952_s10 + $0x24] sm:$0xf] %vm1306_vm1, %v1581_v37  ;;  %1348 = vst.msk [vmem:[%s1952_s10 + $0xa4] sm:$0xf] %vm1306_vm1, %v1613_v39 }
 0x108   : > { %v934_v50 = vadd.f32 %v1931_v38, %v863_v40  ;;  %v966_v51 = vadd.f32 %v1931_v38, %v895_v41  ;;  %v864_v52 = vmul.f32 %v1926_v36, %v640_v48  ;;  %v896_v53 = vmul.f32 %v1926_v36, %v768_v49 }
 0x109   : > { %v1000_v54 = vmax.f32 %v936_v44, 0.0  ;;  %v1032_v55 = vmax.f32 %v968_v45, 0.0  ;;  %v937_v56 = vadd.f32 %v1931_v38, %v866_v46  ;;  %v969_v57 = vadd.f32 %v1931_v38, %v898_v47  ;;  %v1698_v6 = vpop.f32.mrb[16].mxu0  ;;  %v1730_v7 = vpop.f32.mrb[16].mxu1 }
 0x10a   : > { %v998_v58 = vmax.f32 %v934_v50, 0.0  ;;  %v1030_v59 = vmax.f32 %v966_v51, 0.0  ;;  %v935_v60 = vadd.f32 %v1931_v38, %v864_v52  ;;  %v967_v61 = vadd.f32 %v1931_v38, %v896_v53  ;;  %v653_v12 = vpop.f32.mrb[17].mxu0  ;;  %v781_v13 = vpop.f32.mrb[17].mxu1 }
 0x10b   : > { %v1586_v62 = vpack.c.bf16 %v1000_v54, %v1000_v54  ;;  %v1618_v63 = vpack.c.bf16 %v1032_v55, %v1032_v55  ;;  %v1001_v0 = vmax.f32 %v937_v56, 0.0  ;;  %v1033_v1 = vmax.f32 %v969_v57, 0.0  ;;  %v1699_v18 = vpop.f32.mrb[18].mxu0  ;;  %v1731_v19 = vpop.f32.mrb[18].mxu1 }
 0x10c   : > { %v1584_v2 = vpack.c.bf16 %v998_v58, %v998_v58  ;;  %v1616_v3 = vpack.c.bf16 %v1030_v59, %v1030_v59  ;;  %v999_v4 = vmax.f32 %v935_v60, 0.0  ;;  %v1031_v5 = vmax.f32 %v967_v61, 0.0  ;;  %v656_v24 = vpop.f32.mrb[19].mxu0  ;;  %v784_v25 = vpop.f32.mrb[19].mxu1 }
 0x10d   : > { %1321 = vst.msk [vmem:[%s1952_s10 + $0x38] sm:$0xf] %vm1306_vm1, %v1586_v62  ;;  %1353 = vst.msk [vmem:[%s1952_s10 + $0xb8] sm:$0xf] %vm1306_vm1, %v1618_v63  ;;  %v1587_v8 = vpack.c.bf16 %v1001_v0, %v1001_v0  ;;  %v1619_v9 = vpack.c.bf16 %v1033_v1, %v1033_v1  ;;  %v869_v10 = vmul.f32 %v1698_v6, %v1926_v36 }
 0x10e   : > { %v901_v11 = vmul.f32 %v1730_v7, %v1926_v36  ;;  %1319 = vst.msk [vmem:[%s1952_s10 + $0x30] sm:$0xf] %vm1306_vm1, %v1584_v2  ;;  %1351 = vst.msk [vmem:[%s1952_s10 + $0xb0] sm:$0xf] %vm1306_vm1, %v1616_v3  ;;  %v1585_v14 = vpack.c.bf16 %v999_v4, %v999_v4  ;;  %v1617_v15 = vpack.c.bf16 %v1031_v5, %v1031_v5 }
 0x10f   : > { %v867_v16 = vmul.f32 %v1926_v36, %v653_v12  ;;  %v899_v17 = vmul.f32 %v1926_v36, %v781_v13  ;;  %1322 = vst.msk [vmem:[%s1952_s10 + $0x3c] sm:$0xf] %vm1306_vm1, %v1587_v8  ;;  %1354 = vst.msk [vmem:[%s1952_s10 + $0xbc] sm:$0xf] %vm1306_vm1, %v1619_v9  ;;  %v940_v20 = vadd.f32 %v1931_v38, %v869_v10 }
 0x110   : > { %v972_v21 = vadd.f32 %v1931_v38, %v901_v11  ;;  %v870_v22 = vmul.f32 %v1699_v18, %v1926_v36  ;;  %v902_v23 = vmul.f32 %v1731_v19, %v1926_v36  ;;  %1320 = vst.msk [vmem:[%s1952_s10 + $0x34] sm:$0xf] %vm1306_vm1, %v1585_v14  ;;  %1352 = vst.msk [vmem:[%s1952_s10 + $0xb4] sm:$0xf] %vm1306_vm1, %v1617_v15 }
 0x111   : > { %v938_v26 = vadd.f32 %v1931_v38, %v867_v16  ;;  %v970_v27 = vadd.f32 %v1931_v38, %v899_v17  ;;  %v868_v28 = vmul.f32 %v1926_v36, %v656_v24  ;;  %v900_v29 = vmul.f32 %v1926_v36, %v784_v25  ;;  %v1702_v48 = vpop.f32.mrb[20].mxu0  ;;  %v1734_v49 = vpop.f32.mrb[20].mxu1 }
 0x112   : > { %v1004_v30 = vmax.f32 %v940_v20, 0.0  ;;  %v1036_v31 = vmax.f32 %v972_v21, 0.0  ;;  %v941_v32 = vadd.f32 %v1931_v38, %v870_v22  ;;  %v973_v33 = vadd.f32 %v1931_v38, %v902_v23  ;;  %v669_v54 = vpop.f32.mrb[21].mxu0  ;;  %v797_v55 = vpop.f32.mrb[21].mxu1 }
 0x113   : > { %v1002_v34 = vmax.f32 %v938_v26, 0.0  ;;  %v1034_v35 = vmax.f32 %v970_v27, 0.0  ;;  %v939_v37 = vadd.f32 %v1931_v38, %v868_v28  ;;  %v971_v39 = vadd.f32 %v1931_v38, %v900_v29  ;;  %v1703_v60 = vpop.f32.mrb[22].mxu0  ;;  %v1735_v61 = vpop.f32.mrb[22].mxu1 }
 0x114   : > { %v1590_v40 = vpack.c.bf16 %v1004_v30, %v1004_v30  ;;  %v1622_v41 = vpack.c.bf16 %v1036_v31, %v1036_v31  ;;  %v1005_v42 = vmax.f32 %v941_v32, 0.0  ;;  %v1037_v43 = vmax.f32 %v973_v33, 0.0  ;;  %v672_v2 = vpop.f32.mrb[23].mxu0  ;;  %v800_v3 = vpop.f32.mrb[23].mxu1 }
 0x115   : > { %v1588_v44 = vpack.c.bf16 %v1002_v34, %v1002_v34  ;;  %v1620_v45 = vpack.c.bf16 %v1034_v35, %v1034_v35  ;;  %v1003_v46 = vmax.f32 %v939_v37, 0.0  ;;  %v1035_v47 = vmax.f32 %v971_v39, 0.0 }
 0x116   : > { %1325 = vst.msk [vmem:[%s1952_s10 + $0x48] sm:$0xf] %vm1306_vm1, %v1590_v40  ;;  %1357 = vst.msk [vmem:[%s1952_s10 + $0xc8] sm:$0xf] %vm1306_vm1, %v1622_v41  ;;  %v1591_v50 = vpack.c.bf16 %v1005_v42, %v1005_v42  ;;  %v1623_v51 = vpack.c.bf16 %v1037_v43, %v1037_v43  ;;  %v873_v52 = vmul.f32 %v1702_v48, %v1926_v36 }
 0x117   : > { %v905_v53 = vmul.f32 %v1734_v49, %v1926_v36  ;;  %1323 = vst.msk [vmem:[%s1952_s10 + $0x40] sm:$0xf] %vm1306_vm1, %v1588_v44  ;;  %1355 = vst.msk [vmem:[%s1952_s10 + $0xc0] sm:$0xf] %vm1306_vm1, %v1620_v45  ;;  %v1589_v56 = vpack.c.bf16 %v1003_v46, %v1003_v46  ;;  %v1621_v57 = vpack.c.bf16 %v1035_v47, %v1035_v47 }
 0x118   : > { %v871_v58 = vmul.f32 %v1926_v36, %v669_v54  ;;  %v903_v59 = vmul.f32 %v1926_v36, %v797_v55  ;;  %1326 = vst.msk [vmem:[%s1952_s10 + $0x4c] sm:$0xf] %vm1306_vm1, %v1591_v50  ;;  %1358 = vst.msk [vmem:[%s1952_s10 + $0xcc] sm:$0xf] %vm1306_vm1, %v1623_v51  ;;  %v944_v62 = vadd.f32 %v1931_v38, %v873_v52 }
 0x119   : > { %v976_v63 = vadd.f32 %v1931_v38, %v905_v53  ;;  %v874_v0 = vmul.f32 %v1703_v60, %v1926_v36  ;;  %v906_v1 = vmul.f32 %v1735_v61, %v1926_v36  ;;  %1324 = vst.msk [vmem:[%s1952_s10 + $0x44] sm:$0xf] %vm1306_vm1, %v1589_v56  ;;  %1356 = vst.msk [vmem:[%s1952_s10 + $0xc4] sm:$0xf] %vm1306_vm1, %v1621_v57  ;;  %v1706_v24 = vpop.f32.mrb[24].mxu0  ;;  %v1738_v25 = vpop.f32.mrb[24].mxu1 }
 0x11a   : > { %v942_v4 = vadd.f32 %v1931_v38, %v871_v58  ;;  %v974_v5 = vadd.f32 %v1931_v38, %v903_v59  ;;  %v872_v6 = vmul.f32 %v1926_v36, %v672_v2  ;;  %v904_v7 = vmul.f32 %v1926_v36, %v800_v3  ;;  %v685_v30 = vpop.f32.mrb[25].mxu0  ;;  %v813_v31 = vpop.f32.mrb[25].mxu1 }
 0x11b   : > { %v1008_v8 = vmax.f32 %v944_v62, 0.0  ;;  %v1040_v9 = vmax.f32 %v976_v63, 0.0  ;;  %v945_v10 = vadd.f32 %v1931_v38, %v874_v0  ;;  %v977_v11 = vadd.f32 %v1931_v38, %v906_v1  ;;  %v1707_v37 = vpop.f32.mrb[26].mxu0  ;;  %v1739_v39 = vpop.f32.mrb[26].mxu1 }
 0x11c   : > { %v1006_v12 = vmax.f32 %v942_v4, 0.0  ;;  %v1038_v13 = vmax.f32 %v974_v5, 0.0  ;;  %v943_v14 = vadd.f32 %v1931_v38, %v872_v6  ;;  %v975_v15 = vadd.f32 %v1931_v38, %v904_v7  ;;  %v688_v44 = vpop.f32.mrb[27].mxu0  ;;  %v816_v45 = vpop.f32.mrb[27].mxu1 }
 0x11d   : > { %v1594_v16 = vpack.c.bf16 %v1008_v8, %v1008_v8  ;;  %v1626_v17 = vpack.c.bf16 %v1040_v9, %v1040_v9  ;;  %v1009_v18 = vmax.f32 %v945_v10, 0.0  ;;  %v1041_v19 = vmax.f32 %v977_v11, 0.0 }
 0x11e   : > { %v1592_v20 = vpack.c.bf16 %v1006_v12, %v1006_v12  ;;  %v1624_v21 = vpack.c.bf16 %v1038_v13, %v1038_v13  ;;  %v1007_v22 = vmax.f32 %v943_v14, 0.0  ;;  %v1039_v23 = vmax.f32 %v975_v15, 0.0 }
 0x11f   : > { %1329 = vst.msk [vmem:[%s1952_s10 + $0x58] sm:$0xf] %vm1306_vm1, %v1594_v16  ;;  %1361 = vst.msk [vmem:[%s1952_s10 + $0xd8] sm:$0xf] %vm1306_vm1, %v1626_v17  ;;  %v1595_v26 = vpack.c.bf16 %v1009_v18, %v1009_v18  ;;  %v1627_v27 = vpack.c.bf16 %v1041_v19, %v1041_v19  ;;  %v877_v28 = vmul.f32 %v1706_v24, %v1926_v36 }
 0x120   : > { %v909_v29 = vmul.f32 %v1738_v25, %v1926_v36  ;;  %1327 = vst.msk [vmem:[%s1952_s10 + $0x50] sm:$0xf] %vm1306_vm1, %v1592_v20  ;;  %1359 = vst.msk [vmem:[%s1952_s10 + $0xd0] sm:$0xf] %vm1306_vm1, %v1624_v21  ;;  %v1593_v32 = vpack.c.bf16 %v1007_v22, %v1007_v22  ;;  %v1625_v33 = vpack.c.bf16 %v1039_v23, %v1039_v23 }
 0x121   : > { %v875_v34 = vmul.f32 %v1926_v36, %v685_v30  ;;  %v907_v35 = vmul.f32 %v1926_v36, %v813_v31  ;;  %1330 = vst.msk [vmem:[%s1952_s10 + $0x5c] sm:$0xf] %vm1306_vm1, %v1595_v26  ;;  %1362 = vst.msk [vmem:[%s1952_s10 + $0xdc] sm:$0xf] %vm1306_vm1, %v1627_v27  ;;  %v948_v40 = vadd.f32 %v1931_v38, %v877_v28  ;;  %v1710_v2 = vpop.f32.mrb[28].mxu0  ;;  %v1742_v3 = vpop.f32.mrb[28].mxu1 }
 0x122   : > { %v980_v41 = vadd.f32 %v1931_v38, %v909_v29  ;;  %v878_v42 = vmul.f32 %v1707_v37, %v1926_v36  ;;  %v910_v43 = vmul.f32 %v1739_v39, %v1926_v36  ;;  %1328 = vst.msk [vmem:[%s1952_s10 + $0x54] sm:$0xf] %vm1306_vm1, %v1593_v32  ;;  %1360 = vst.msk [vmem:[%s1952_s10 + $0xd4] sm:$0xf] %vm1306_vm1, %v1625_v33  ;;  %v701_v8 = vpop.f32.mrb[29].mxu0  ;;  %v829_v9 = vpop.f32.mrb[29].mxu1 }
 0x123   : > { %v946_v46 = vadd.f32 %v1931_v38, %v875_v34  ;;  %v978_v47 = vadd.f32 %v1931_v38, %v907_v35  ;;  %v876_v48 = vmul.f32 %v1926_v36, %v688_v44  ;;  %v908_v49 = vmul.f32 %v1926_v36, %v816_v45  ;;  %v1711_v14 = vpop.f32.mrb[30].mxu0  ;;  %v1743_v15 = vpop.f32.mrb[30].mxu1 }
 0x124   : > { %v1012_v50 = vmax.f32 %v948_v40, 0.0  ;;  %v1044_v51 = vmax.f32 %v980_v41, 0.0  ;;  %v949_v52 = vadd.f32 %v1931_v38, %v878_v42  ;;  %v981_v53 = vadd.f32 %v1931_v38, %v910_v43  ;;  %v704_v20 = vpop.f32.mrb[31].mxu0  ;;  %v832_v21 = vpop.f32.mrb[31].mxu1 }
 0x125   : > { %v1010_v54 = vmax.f32 %v946_v46, 0.0  ;;  %v1042_v55 = vmax.f32 %v978_v47, 0.0  ;;  %v947_v56 = vadd.f32 %v1931_v38, %v876_v48  ;;  %v979_v57 = vadd.f32 %v1931_v38, %v908_v49 }
 0x126   : > { %v1598_v58 = vpack.c.bf16 %v1012_v50, %v1012_v50  ;;  %v1630_v59 = vpack.c.bf16 %v1044_v51, %v1044_v51  ;;  %v1013_v60 = vmax.f32 %v949_v52, 0.0  ;;  %v1045_v61 = vmax.f32 %v981_v53, 0.0 }
 0x127   : > { %v1596_v62 = vpack.c.bf16 %v1010_v54, %v1010_v54  ;;  %v1628_v63 = vpack.c.bf16 %v1042_v55, %v1042_v55  ;;  %v1011_v0 = vmax.f32 %v947_v56, 0.0  ;;  %v1043_v1 = vmax.f32 %v979_v57, 0.0 }
 0x128   : > { %1333 = vst.msk [vmem:[%s1952_s10 + $0x68] sm:$0xf] %vm1306_vm1, %v1598_v58  ;;  %1365 = vst.msk [vmem:[%s1952_s10 + $0xe8] sm:$0xf] %vm1306_vm1, %v1630_v59  ;;  %v1599_v4 = vpack.c.bf16 %v1013_v60, %v1013_v60  ;;  %v1631_v5 = vpack.c.bf16 %v1045_v61, %v1045_v61  ;;  %v881_v6 = vmul.f32 %v1710_v2, %v1926_v36 }
 0x129   : > { %v913_v7 = vmul.f32 %v1742_v3, %v1926_v36  ;;  %1331 = vst.msk [vmem:[%s1952_s10 + $0x60] sm:$0xf] %vm1306_vm1, %v1596_v62  ;;  %1363 = vst.msk [vmem:[%s1952_s10 + $0xe0] sm:$0xf] %vm1306_vm1, %v1628_v63  ;;  %v1597_v10 = vpack.c.bf16 %v1011_v0, %v1011_v0  ;;  %v1629_v11 = vpack.c.bf16 %v1043_v1, %v1043_v1 }
 0x12a   : > { %v879_v12 = vmul.f32 %v1926_v36, %v701_v8  ;;  %v911_v13 = vmul.f32 %v1926_v36, %v829_v9  ;;  %1334 = vst.msk [vmem:[%s1952_s10 + $0x6c] sm:$0xf] %vm1306_vm1, %v1599_v4  ;;  %1366 = vst.msk [vmem:[%s1952_s10 + $0xec] sm:$0xf] %vm1306_vm1, %v1631_v5  ;;  %v952_v16 = vadd.f32 %v1931_v38, %v881_v6 }
 0x12b   : > { %v984_v17 = vadd.f32 %v1931_v38, %v913_v7  ;;  %v882_v18 = vmul.f32 %v1711_v14, %v1926_v36  ;;  %v914_v19 = vmul.f32 %v1743_v15, %v1926_v36  ;;  %1332 = vst.msk [vmem:[%s1952_s10 + $0x64] sm:$0xf] %vm1306_vm1, %v1597_v10  ;;  %1364 = vst.msk [vmem:[%s1952_s10 + $0xe4] sm:$0xf] %vm1306_vm1, %v1629_v11 }
 0x12c   : > { %v950_v22 = vadd.f32 %v1931_v38, %v879_v12  ;;  %v982_v23 = vadd.f32 %v1931_v38, %v911_v13  ;;  %v880_v24 = vmul.f32 %v1926_v36, %v704_v20  ;;  %v912_v25 = vmul.f32 %v1926_v36, %v832_v21 }
 0x12d   : > { %v1016_v26 = vmax.f32 %v952_v16, 0.0  ;;  %v1048_v27 = vmax.f32 %v984_v17, 0.0  ;;  %v953_v28 = vadd.f32 %v1931_v38, %v882_v18  ;;  %v985_v29 = vadd.f32 %v1931_v38, %v914_v19 }
 0x12e   : > { %v1014_v30 = vmax.f32 %v950_v22, 0.0  ;;  %v1046_v31 = vmax.f32 %v982_v23, 0.0  ;;  %v951_v32 = vadd.f32 %v1931_v38, %v880_v24  ;;  %v983_v33 = vadd.f32 %v1931_v38, %v912_v25 }
 0x12f   : > { %v1602_v34 = vpack.c.bf16 %v1016_v26, %v1016_v26  ;;  %v1634_v35 = vpack.c.bf16 %v1048_v27, %v1048_v27  ;;  %v1017_v36 = vmax.f32 %v953_v28, 0.0  ;;  %v1049_v37 = vmax.f32 %v985_v29, 0.0 }
 0x130   : > { %v1600_v39 = vpack.c.bf16 %v1014_v30, %v1014_v30  ;;  %v1632_v40 = vpack.c.bf16 %v1046_v31, %v1046_v31  ;;  %v1015_v41 = vmax.f32 %v951_v32, 0.0  ;;  %v1047_v42 = vmax.f32 %v983_v33, 0.0 }
 0x131   : > { %1337 = vst.msk [vmem:[%s1952_s10 + $0x78] sm:$0xf] %vm1306_vm1, %v1602_v34  ;;  %1369 = vst.msk [vmem:[%s1952_s10 + $0xf8] sm:$0xf] %vm1306_vm1, %v1634_v35  ;;  %v1603_v43 = vpack.c.bf16 %v1017_v36, %v1017_v36  ;;  %v1635_v44 = vpack.c.bf16 %v1049_v37, %v1049_v37 }
 0x132   : > { %1335 = vst.msk [vmem:[%s1952_s10 + $0x70] sm:$0xf] %vm1306_vm1, %v1600_v39  ;;  %1367 = vst.msk [vmem:[%s1952_s10 + $0xf0] sm:$0xf] %vm1306_vm1, %v1632_v40  ;;  %v1601_v38 = vpack.c.bf16 %v1015_v41, %v1015_v41  ;;  %v1633_v45 = vpack.c.bf16 %v1047_v42, %v1047_v42 }
 0x133   : > { %1338 = vst.msk [vmem:[%s1952_s10 + $0x7c] sm:$0xf] %vm1306_vm1, %v1603_v43  ;;  %1370 = vst.msk [vmem:[%s1952_s10 + $0xfc] sm:$0xf] %vm1306_vm1, %v1635_v44 }
 0x134   : > { %1336 = vst.msk [vmem:[%s1952_s10 + $0x74] sm:$0xf] %vm1306_vm1, %v1601_v38  ;;  %1368 = vst.msk [vmem:[%s1952_s10 + $0xf4] sm:$0xf] %vm1306_vm1, %v1633_v45 }
 0x135 PF: > { %s14_s15 = sadd.s32 1, %s1802_s15  }
 0x136   : > { %p11_p4 = scmp.ge.s32.totalorder %s14_s15, 6  }
 0x138   :  { %13 = sbr.rel (!%p11_p4) target bundleno = 1 (0x1), region = 66 }

</bundles_post_ra>
